<compile_context>
chip_gen: v5e
topology: v5e:2x2
jax: 0.10.0
libtpu: 0.0.40
codegen_flags: <defaults>
</compile_context>

<pallas_src>
import functools

import jax
import jax.numpy as jnp
from jax.experimental import pallas as pl
from jax.experimental.pallas import tpu as pltpu


def _med3(a, b, c):
    # Median of three via min/max (4 VPU ops).
    return jnp.maximum(jnp.minimum(a, b), jnp.minimum(jnp.maximum(a, b), c))


def _median3x3_kernel(col_ref, x_ref, o_ref, *, W):
    """3x3 median filter, stride 1, reflect 'same' padding.

    col_ref: (1, P) int32 -- column index of every flattened position.
    x_ref / o_ref: (Bc, P) blocks, each row is one flattened (H, W) plane, so
    the lane dim is P = H*W (dense) and every window offset is a slice/select
    of the same resident block (no padded tensor is ever materialized).
    """
    P = x_ref.shape[1]
    x = x_ref[...].astype(jnp.float32)

    # ---- vertical neighbours, reflect border baked into the slices --------
    # up[p] == x[p - W] (row above);  row -1 reflects to row 1
    # dn[p] == x[p + W] (row below);  row H reflects to row H-2
    up = jnp.concatenate([x[:, W:2 * W], x[:, :P - W]], axis=1)
    dn = jnp.concatenate([x[:, W:], x[:, P - 2 * W:P - W]], axis=1)

    # ---- shared column sort: each vertical triple sorted once, reused by the
    # three horizontally adjacent windows ------------------------------------
    mn = jnp.minimum(up, dn)
    mx = jnp.maximum(up, dn)
    lo = jnp.minimum(mn, x)                       # column minimum
    hi = jnp.maximum(mx, x)                       # column maximum
    mid = jnp.maximum(mn, jnp.minimum(mx, x))     # column median

    # ---- horizontal neighbours (+-1 along the flattened lane axis) --------
    # Reflect fix-up (col 0 -> col 1, col W-1 -> col W-2); the same masks also
    # repair the row-boundary positions of the flattened layout.
    col = col_ref[...]
    first_col = col == 0
    last_col = col == (W - 1)

    def _hshift(a):
        a_m1 = jnp.concatenate([a[:, :1], a[:, :P - 1]], axis=1)   # a[p-1]
        a_p1 = jnp.concatenate([a[:, 1:], a[:, P - 1:]], axis=1)   # a[p+1]
        left = jnp.where(first_col, a_p1, a_m1)
        right = jnp.where(last_col, a_m1, a_p1)
        return left, right

    lo_l, lo_r = _hshift(lo)
    hi_l, hi_r = _hshift(hi)
    mid_l, mid_r = _hshift(mid)

    max_lo = jnp.maximum(jnp.maximum(lo_l, lo), lo_r)
    min_hi = jnp.minimum(jnp.minimum(hi_l, hi), hi_r)
    med_mid = _med3(mid_l, mid, mid_r)

    o_ref[...] = _med3(max_lo, med_mid, min_hi).astype(o_ref.dtype)


def median_pool2d(x, kernel_size=3, stride=1, padding=0, same=True):
    """MedianPool2d(kernel_size=3, stride=1, same=True) forward pass."""
    del padding  # unused in the 'same' branch (matches the PyTorch module)
    assert kernel_size == 3 and stride == 1 and same, (
        "kernel specialized to kernel_size=3, stride=1, same=True")
    N, C, H, W = x.shape
    assert H >= 2 and W >= 2, "reflect padding needs H, W >= 2"

    NC, P = N * C, H * W
    itemsize = x.dtype.itemsize
    x2 = x.reshape(NC, P)  # free reshape (contiguous)

    # Planes per grid step: ~1 MiB of input per block keeps total VMEM
    # (double-buffered I/O + elementwise temporaries) comfortably under the
    # scoped limit on every TPU generation while amortizing per-step overhead.
    target_block_bytes = 1 << 20
    planes_per_block = max(1, target_block_bytes // (P * itemsize))
    if planes_per_block >= NC:
        bc = NC                                   # whole batch in one block
    else:
        bc = min(NC, max(8, (planes_per_block // 8) * 8))
    # Block second-to-last dim is a multiple of 8 or the full dim (TPU tiling
    # rule); the last dim equals the full array dim, so stores are lane-dense.
    # TODO(synk): very large planes (H*W*itemsize >> 1 MiB) should be tiled
    # into row strips with a 2-row halo instead of whole planes per block.

    grid = (pl.cdiv(NC, bc),)

    # Column index of each flattened position, used in-kernel for the
    # left/right reflect fix-ups (avoids in-kernel integer mod).
    col_ids = (jnp.arange(P, dtype=jnp.int32) % W).reshape(1, P)

    kernel = functools.partial(_median3x3_kernel, W=W)

    cost = pl.CostEstimate(
        flops=24 * NC * P,                  # min/max/select ops per output px
        transcendentals=0,
        bytes_accessed=2 * NC * P * itemsize,
    )

    out2 = pl.pallas_call(
        kernel,
        out_shape=jax.ShapeDtypeStruct((NC, P), x.dtype),
        grid_spec=pltpu.PrefetchScalarGridSpec(
            num_scalar_prefetch=0,
            grid=grid,
            in_specs=[
                pl.BlockSpec((1, P), lambda i: (0, 0)),   # col_ids (resident)
                pl.BlockSpec((bc, P), lambda i: (i, 0)),  # batch of planes
            ],
            out_specs=pl.BlockSpec((bc, P), lambda i: (i, 0)),
        ),
        compiler_params=pltpu.CompilerParams(
            dimension_semantics=("parallel",),
            vmem_limit_bytes=32 * 1024 * 1024,
        ),
        cost_estimate=cost,
    )(col_ids, x2)

    return out2.reshape(N, C, H, W)


# ---------------------------------------------------------------------------
# Pure-JAX reference (correctness check only).
# ---------------------------------------------------------------------------
def _median_pool2d_ref(x):
    N, C, H, W = x.shape
    xp = jnp.pad(x, ((0, 0), (0, 0), (1, 1), (1, 1)), mode="reflect")
    wins = jnp.stack(
        [xp[:, :, di:di + H, dj:dj + W] for di in range(3) for dj in range(3)],
        axis=-1,
    )
    return jnp.median(wins, axis=-1)


if __name__ == "__main__":
    key = jax.random.PRNGKey(0)
    x = jax.random.normal(key, (2, 4, 16, 16), dtype=jnp.float32)

    out = median_pool2d(x)
    out = jax.block_until_ready(out)

    ref = _median_pool2d_ref(x)
    assert out.shape == (2, 4, 16, 16)
    assert jnp.allclose(out, ref, atol=1e-6), "mismatch vs reference"

    print("KERNEL_OK")
</pallas_src>

<mosaic_0001>
module attributes {stable_mosaic.version = 11 : i64} {
  func.func @_median3x3_kernel(%arg0: i32, %arg1: memref<1x256xi32, #tpu.memory_space<vmem>>, %arg2: memref<8x256xf32, #tpu.memory_space<vmem>>, %arg3: memref<8x256xf32, #tpu.memory_space<vmem>>) attributes {dimension_semantics = [#tpu.dimension_semantics<parallel>], iteration_bounds = array<i64: 1>, scalar_prefetch = 0 : i64, scratch_operands = 0 : i64, tpu.core_type = #tpu.core_type<tc>, window_params = [{pipeline_mode = #tpu.pipeline_mode<synchronous>, transform_indices = @transform_0, window_bounds = array<i64: 1, 256>}, {transform_indices = @transform_1, window_bounds = array<i64: 8, 256>}, {transform_indices = @transform_2, window_bounds = array<i64: 8, 256>}]} {
    %c0 = arith.constant 0 : index
    %c0_0 = arith.constant 0 : index
    %0 = vector.load %arg2[%c0, %c0_0] : memref<8x256xf32, #tpu.memory_space<vmem>>, vector<8x256xf32>
    %1 = vector.extract_strided_slice %0 {offsets = [0, 16], sizes = [8, 16], strides = [1, 1]} : vector<8x256xf32> to vector<8x16xf32>
    %2 = vector.extract_strided_slice %0 {offsets = [0, 0], sizes = [8, 240], strides = [1, 1]} : vector<8x256xf32> to vector<8x240xf32>
    %3 = tpu.concatenate %1, %2 in 1 : vector<8x16xf32>, vector<8x240xf32> -> vector<8x256xf32>
    %4 = vector.extract_strided_slice %0 {offsets = [0, 16], sizes = [8, 240], strides = [1, 1]} : vector<8x256xf32> to vector<8x240xf32>
    %5 = vector.extract_strided_slice %0 {offsets = [0, 224], sizes = [8, 16], strides = [1, 1]} : vector<8x256xf32> to vector<8x16xf32>
    %6 = tpu.concatenate %4, %5 in 1 : vector<8x240xf32>, vector<8x16xf32> -> vector<8x256xf32>
    %7 = arith.minimumf %3, %6 : vector<8x256xf32>
    %8 = arith.maximumf %3, %6 : vector<8x256xf32>
    %9 = arith.minimumf %7, %0 : vector<8x256xf32>
    %10 = arith.maximumf %8, %0 : vector<8x256xf32>
    %11 = arith.minimumf %8, %0 : vector<8x256xf32>
    %12 = arith.maximumf %7, %11 : vector<8x256xf32>
    %c0_1 = arith.constant 0 : index
    %c0_2 = arith.constant 0 : index
    %13 = vector.load %arg1[%c0_1, %c0_2] : memref<1x256xi32, #tpu.memory_space<vmem>>, vector<1x256xi32>
    %c0_i32 = arith.constant 0 : i32
    %14 = vector.broadcast %c0_i32 : i32 to vector<1x256xi32>
    %15 = arith.cmpi eq, %13, %14 : vector<1x256xi32>
    %c15_i32 = arith.constant 15 : i32
    %16 = vector.broadcast %c15_i32 : i32 to vector<1x256xi32>
    %17 = arith.cmpi eq, %13, %16 : vector<1x256xi32>
    %18 = vector.extract_strided_slice %9 {offsets = [0, 0], sizes = [8, 1], strides = [1, 1]} : vector<8x256xf32> to vector<8x1xf32>
    %19 = vector.extract_strided_slice %9 {offsets = [0, 0], sizes = [8, 255], strides = [1, 1]} : vector<8x256xf32> to vector<8x255xf32>
    %20 = tpu.concatenate %18, %19 in 1 : vector<8x1xf32>, vector<8x255xf32> -> vector<8x256xf32>
    %21 = vector.extract_strided_slice %9 {offsets = [0, 1], sizes = [8, 255], strides = [1, 1]} : vector<8x256xf32> to vector<8x255xf32>
    %22 = vector.extract_strided_slice %9 {offsets = [0, 255], sizes = [8, 1], strides = [1, 1]} : vector<8x256xf32> to vector<8x1xf32>
    %23 = tpu.concatenate %21, %22 in 1 : vector<8x255xf32>, vector<8x1xf32> -> vector<8x256xf32>
    %24 = vector.shape_cast %15 : vector<1x256xi1> to vector<1x256xi1>
    %25 = vector.broadcast %24 : vector<1x256xi1> to vector<8x256xi1>
    %26 = arith.select %25, %23, %20 : vector<8x256xi1>, vector<8x256xf32>
    %27 = vector.shape_cast %17 : vector<1x256xi1> to vector<1x256xi1>
    %28 = vector.broadcast %27 : vector<1x256xi1> to vector<8x256xi1>
    %29 = arith.select %28, %20, %23 : vector<8x256xi1>, vector<8x256xf32>
    %30 = vector.extract_strided_slice %10 {offsets = [0, 0], sizes = [8, 1], strides = [1, 1]} : vector<8x256xf32> to vector<8x1xf32>
    %31 = vector.extract_strided_slice %10 {offsets = [0, 0], sizes = [8, 255], strides = [1, 1]} : vector<8x256xf32> to vector<8x255xf32>
    %32 = tpu.concatenate %30, %31 in 1 : vector<8x1xf32>, vector<8x255xf32> -> vector<8x256xf32>
    %33 = vector.extract_strided_slice %10 {offsets = [0, 1], sizes = [8, 255], strides = [1, 1]} : vector<8x256xf32> to vector<8x255xf32>
    %34 = vector.extract_strided_slice %10 {offsets = [0, 255], sizes = [8, 1], strides = [1, 1]} : vector<8x256xf32> to vector<8x1xf32>
    %35 = tpu.concatenate %33, %34 in 1 : vector<8x255xf32>, vector<8x1xf32> -> vector<8x256xf32>
    %36 = vector.shape_cast %15 : vector<1x256xi1> to vector<1x256xi1>
    %37 = vector.broadcast %36 : vector<1x256xi1> to vector<8x256xi1>
    %38 = arith.select %37, %35, %32 : vector<8x256xi1>, vector<8x256xf32>
    %39 = vector.shape_cast %17 : vector<1x256xi1> to vector<1x256xi1>
    %40 = vector.broadcast %39 : vector<1x256xi1> to vector<8x256xi1>
    %41 = arith.select %40, %32, %35 : vector<8x256xi1>, vector<8x256xf32>
    %42 = vector.extract_strided_slice %12 {offsets = [0, 0], sizes = [8, 1], strides = [1, 1]} : vector<8x256xf32> to vector<8x1xf32>
    %43 = vector.extract_strided_slice %12 {offsets = [0, 0], sizes = [8, 255], strides = [1, 1]} : vector<8x256xf32> to vector<8x255xf32>
    %44 = tpu.concatenate %42, %43 in 1 : vector<8x1xf32>, vector<8x255xf32> -> vector<8x256xf32>
    %45 = vector.extract_strided_slice %12 {offsets = [0, 1], sizes = [8, 255], strides = [1, 1]} : vector<8x256xf32> to vector<8x255xf32>
    %46 = vector.extract_strided_slice %12 {offsets = [0, 255], sizes = [8, 1], strides = [1, 1]} : vector<8x256xf32> to vector<8x1xf32>
    %47 = tpu.concatenate %45, %46 in 1 : vector<8x255xf32>, vector<8x1xf32> -> vector<8x256xf32>
    %48 = vector.shape_cast %15 : vector<1x256xi1> to vector<1x256xi1>
    %49 = vector.broadcast %48 : vector<1x256xi1> to vector<8x256xi1>
    %50 = arith.select %49, %47, %44 : vector<8x256xi1>, vector<8x256xf32>
    %51 = vector.shape_cast %17 : vector<1x256xi1> to vector<1x256xi1>
    %52 = vector.broadcast %51 : vector<1x256xi1> to vector<8x256xi1>
    %53 = arith.select %52, %44, %47 : vector<8x256xi1>, vector<8x256xf32>
    %54 = arith.maximumf %26, %9 : vector<8x256xf32>
    %55 = arith.maximumf %54, %29 : vector<8x256xf32>
    %56 = arith.minimumf %38, %10 : vector<8x256xf32>
    %57 = arith.minimumf %56, %41 : vector<8x256xf32>
    %58 = arith.minimumf %50, %12 : vector<8x256xf32>
    %59 = arith.maximumf %50, %12 : vector<8x256xf32>
    %60 = arith.minimumf %59, %53 : vector<8x256xf32>
    %61 = arith.maximumf %58, %60 : vector<8x256xf32>
    %62 = arith.minimumf %55, %61 : vector<8x256xf32>
    %63 = arith.maximumf %55, %61 : vector<8x256xf32>
    %64 = arith.minimumf %63, %57 : vector<8x256xf32>
    %65 = arith.maximumf %62, %64 : vector<8x256xf32>
    %c0_3 = arith.constant 0 : index
    %c0_4 = arith.constant 0 : index
    %66 = vector.load %arg3[%c0_3, %c0_4] : memref<8x256xf32, #tpu.memory_space<vmem>>, vector<8x256xf32>
    tpu.vector_store %arg3[%c0_3, %c0_4], %65 {strides = array<i32>} : memref<8x256xf32, #tpu.memory_space<vmem>>, vector<8x256xf32>,
    return
  }
  func.func @transform_0(%arg0: i32) -> (i32, i32) {
    %c0_i32 = arith.constant 0 : i32
    %c0_i32_0 = arith.constant 0 : i32
    %c0_i32_1 = arith.constant 0 : i32
    return %c0_i32, %c0_i32_0 : i32, i32
  }
  func.func @transform_1(%arg0: i32) -> (i32, i32) {
    %c0_i32 = arith.constant 0 : i32
    %c0_i32_0 = arith.constant 0 : i32
    return %arg0, %c0_i32 : i32, i32
  }
  func.func @transform_2(%arg0: i32) -> (i32, i32) {
    %c0_i32 = arith.constant 0 : i32
    %c0_i32_0 = arith.constant 0 : i32
    return %arg0, %c0_i32 : i32, i32
  }
}

</mosaic_0001>

<bundles_post_ra>
// kernel: tpu_custom_call.1
= control target key start
LH: loop header
LB: loop body
LE: loop exit
PB: predicated region body
PF: predicated region fallthrough
CT: control target
= control target key end

     0   :  { %7 = vsyncpa [#allocation3], 0  ;;  %s402_s0 = inlined_call_operand.hbm [shape: s32[1,256], index: 0, kind: input, shape index: {}]   ;;  %s403_s1 = inlined_call_operand.hbm [shape: f32[8,256], index: 1, kind: input, shape index: {}]   ;;  %s404_s2 = inlined_call_operand.hbm [shape: f32[8,256], index: 2, kind: output, shape index: {}]  }
   0x1   :  { %8 = vsyncpa [#allocation6], 0 }
   0x2   :  { %9 = vsyncpa [#allocation4], 0  ;;  %s15_s11 = sshll.u32 %s402_s0, 4  ;;  %s287_s12 = smov [#allocation2]   ;;  %s16_s11 = int_to_ptr.hbm [resolvable:$true] %s15_s11 }
   0x3   :  { %s17_s13 = sshll.u32 %s287_s12, 4  ;;  %s26_s16 = sshll.u32 %s403_s1, 4  ;;  %s18_s13 = int_to_ptr.vmem [resolvable:$true] %s17_s13  ;;  %s27_s16 = int_to_ptr.hbm [resolvable:$true] %s26_s16 }
   0x4   :  { %20 = dma.hbm_to_vmem [thread:$0]  %s16_s11, 32, %s18_s13, [#allocation3]  }
   0x5   :  { %s288_s17 = smov [#allocation5]  }
   0x6   :  { %s28_s18 = sshll.u32 %s288_s17, 4  ;;  %s29_s18 = int_to_ptr.vmem [resolvable:$true] %s28_s18 }
   0x7   :  { %31 = dma.hbm_to_vmem [thread:$0]  %s27_s16, 256, %s29_s18, [#allocation6]  }
   0x8   :  { %281 = dma.done.wait [#allocation3], 32  }
   0x9   :  { %282 = vsyncadd [#allocation3], 4294967264 }
   0xa   :  { %283 = dma.done.wait [#allocation6], 256  }
   0xb   :  { %284 = vsyncadd [#allocation6], 4294967040  ;;  %v41_v0 = vld [vmem:[#allocation5 + $0x8] sm:$0xff]  ;;  %v40_v1 = vld [vmem:[#allocation5] sm:$0xff]  ;;  %s289_s0 = smov 16   ;;  %s290_s19 = smov 112  }
   0xc   :  { %49 = vrot.lane.b32.xlu1 %v41_v0, %s289_s0  ;;  %43 = vrot.lane.b32.xlu0 %v40_v1, %s290_s19  ;;  %vm58_vm0 = vcmask 916480   ;;  %vm51_vm1 = vcmask 130048   ;;  %s291_s1 = smov 127   ;;  %s292_s20 = smov 1   ;;  %v76_v25 = vld [vmem:[#allocation2] sm:$0x3] }
   0xd   :  { %vm77_vm2 = vcmp.eq.s32.totalorder %v76_v25, 0  ;;  %v293_v28 = vmov 0   ;;  %vm78_vm3 = vcmp.eq.s32.totalorder %v76_v25, 15  ;;  %vm94_vm4 = vcmask 1039360   ;;  %s294_s21 = smov [#allocation7]   ;;  %s190_s25 = sshll.u32 %s404_s2, 4  ;;  %s191_s25 = int_to_ptr.hbm [resolvable:$true] %s190_s25 }
   0xe   :  { %v99_v29 = vsel %vm77_vm2, 1, %v293_v28  ;;  %vm85_vm5 = vcmask 7168   ;;  %v106_v35 = vsel %vm78_vm3, 1, %v293_v28  ;;  %s188_s22 = sshll.u32 %s294_s21, 4  ;;  %s189_s22 = int_to_ptr.vmem [resolvable:$true] %s188_s22 }
   0xf   :  { %v101_v31 = vperm.slane %v99_v29, 1  ;;  %v100_v36 = vperm.slane %v99_v29, 0  ;;  %v107_v40 = vperm.slane %v106_v35, 0  ;;  %v108_v41 = vperm.slane %v106_v35, 1 }
  0x11   :  { %vm339_vm6 = vcmp.eq.s32.totalorder %v101_v31, 1  ;;  %vm345_vm7 = vcmp.eq.s32.totalorder %v100_v36, 1  ;;  %vm354_vm8 = vcmp.eq.s32.totalorder %v107_v40, 1  ;;  %vm358_vm9 = vcmp.eq.s32.totalorder %v108_v41, 1 }
  0x14   :  { %56 = vrot.lane.b32.xlu1 %v41_v0, %s290_s19  ;;  %47 = vrot.lane.b32.xlu0 %v40_v1, %s289_s0 }
  0x7e   :  { %v50_v2 = vpop.permute.xlu1 %49  ;;  %v44_v3 = vpop.permute.xlu0 %43 }
  0x86   :  { %v57_v4 = vpop.permute.xlu1 %56  ;;  %v48_v5 = vpop.permute.xlu0 %47 }
  0x87   :  { %v59_v6 = vsel %vm58_vm0, %v44_v3, %v57_v4  ;;  %v63_v7 = vsel %vm58_vm0, %v57_v4, %v50_v2  ;;  %v52_v8 = vsel %vm51_vm1, %v48_v5, %v50_v2  ;;  %v55_v9 = vsel %vm51_vm1, %v44_v3, %v48_v5 }
  0x88   :  { %v64_v10 = vmin.f32 %v55_v9, %v59_v6  ;;  %v65_v11 = vmin.f32 %v52_v8, %v63_v7  ;;  %v67_v12 = vmax.f32 %v52_v8, %v63_v7  ;;  %v66_v16 = vmax.f32 %v55_v9, %v59_v6 }
  0x8a   :  { %v316_v13 = vmin.f32 %v64_v10, %v40_v1  ;;  %v318_v14 = vmin.f32 %v65_v11, %v41_v0  ;;  %v73_v15 = vmin.f32 %v67_v12, %v41_v0  ;;  %v325_v18 = vmax.f32 %v66_v16, %v40_v1 }
  0x8b   :  { %v72_v19 = vmin.f32 %v66_v16, %v40_v1  ;;  %v330_v20 = vmax.f32 %v67_v12, %v41_v0 }
  0x8c   :  { %90 = vrot.lane.b32.xlu1 %v316_v13, %s291_s1  ;;  %81 = vrot.lane.b32.xlu2 %v316_v13, %s292_s20  ;;  %v323_v17 = vmax.f32 %v65_v11, %v73_v15 }
  0x8d   :  { %83 = vrot.lane.b32.xlu0 %v318_v14, %s292_s20  ;;  %v74_v21 = vmax.f32 %v64_v10, %v72_v19 }
  0x94   :  { %147 = vrot.lane.b32.xlu1 %v323_v17, %s291_s1  ;;  %92 = vrot.lane.b32.xlu2 %v318_v14, %s291_s1 }
  0x95   :  { %115 = vrot.lane.b32.xlu0 %v325_v18, %s292_s20 }
  0x9c   :  { %117 = vrot.lane.b32.xlu1 %v330_v20, %s292_s20  ;;  %137 = vrot.lane.b32.xlu2 %v74_v21, %s292_s20 }
  0x9d   :  { %145 = vrot.lane.b32.xlu0 %v74_v21, %s291_s1 }
  0xa4   :  { %139 = vrot.lane.b32.xlu2 %v323_v17, %s292_s20 }
  0xa5   :  { %125 = vrot.lane.b32.xlu0 %v330_v20, %s291_s1 }
  0xac   :  { %123 = vrot.lane.b32.xlu2 %v325_v18, %s291_s1 }
  0xe6   :  { %v82_v22 = vpop.permute.xlu2 %81 }
  0xe7   :  { %v89_v52 = vsel %vm85_vm5, %v316_v13, %v82_v22 }
  0xee   :  { %v93_v23 = vpop.permute.xlu2 %92 }
  0xef   :  { %v98_v53 = vsel %vm94_vm4, %v93_v23, %v318_v14 }
  0xf6   :  { %v138_v24 = vpop.permute.xlu2 %137 }
  0xf7   :  { %v144_v45 = vsel %vm85_vm5, %v74_v21, %v138_v24 }
  0xfe   :  { %v91_v26 = vpop.permute.xlu1 %90  ;;  %v140_v33 = vpop.permute.xlu2 %139 }
  0xff   :  { %v84_v27 = vpop.permute.xlu0 %83  ;;  %v141_v37 = vsel %vm85_vm5, %v138_v24, %v140_v33  ;;  %v95_v46 = vsel %vm94_vm4, %v91_v26, %v93_v23 }
 0x100   :  { %v86_v47 = vsel %vm85_vm5, %v82_v22, %v84_v27  ;;  %v104_v56 = vsel %vm345_vm7, %v95_v46, %v89_v52  ;;  %v111_v10 = vsel %vm354_vm8, %v89_v52, %v95_v46 }
 0x101   :  { %v105_v57 = vsel %vm339_vm6, %v98_v53, %v86_v47  ;;  %v157_v63 = vmax.f32 %v104_v56, %v316_v13  ;;  %v112_v11 = vsel %vm358_vm9, %v86_v47, %v98_v53 }
 0x102   :  { %v158_v0 = vmax.f32 %v105_v57, %v318_v14 }
 0x103   :  { %v159_v14 = vmax.f32 %v157_v63, %v111_v10 }
 0x104   :  { %v160_v15 = vmax.f32 %v158_v0, %v112_v11 }
 0x106   :  { %v148_v30 = vpop.permute.xlu1 %147  ;;  %v124_v3 = vpop.permute.xlu2 %123 }
 0x107   :  { %v116_v32 = vpop.permute.xlu0 %115  ;;  %v152_v34 = vsel %vm94_vm4, %v148_v30, %v323_v17 }
 0x108   :  { %v154_v39 = vsel %vm339_vm6, %v152_v34, %v141_v37  ;;  %v156_v54 = vsel %vm358_vm9, %v141_v37, %v152_v34  ;;  %v122_v4 = vsel %vm85_vm5, %v325_v18, %v116_v32 }
 0x109   :  { %v168_v43 = vmax.f32 %v154_v39, %v323_v17  ;;  %v166_v61 = vmin.f32 %v154_v39, %v323_v17 }
 0x10b   :  { %v170_v58 = vmin.f32 %v168_v43, %v156_v54 }
 0x10d   :  { %v172_v2 = vmax.f32 %v166_v61, %v170_v58 }
 0x10e   :  { %v118_v62 = vpop.permute.xlu1 %117 }
 0x10f   :  { %v146_v44 = vpop.permute.xlu0 %145  ;;  %v119_v6 = vsel %vm85_vm5, %v116_v32, %v118_v62  ;;  %v176_v23 = vmax.f32 %v160_v15, %v172_v2  ;;  %v174_v26 = vmin.f32 %v160_v15, %v172_v2 }
 0x110   :  { %v149_v48 = vsel %vm94_vm4, %v146_v44, %v148_v30 }
 0x111   :  { %v153_v51 = vsel %vm345_vm7, %v149_v48, %v144_v45  ;;  %v155_v59 = vsel %vm354_vm8, %v144_v45, %v149_v48 }
 0x112   :  { %v167_v55 = vmax.f32 %v153_v51, %v74_v21  ;;  %v165_v1 = vmin.f32 %v153_v51, %v74_v21 }
 0x114   :  { %v169_v60 = vmin.f32 %v167_v55, %v155_v59 }
 0x116   :  { %v171_v7 = vmax.f32 %v165_v1, %v169_v60 }
 0x117   :  { %v126_v5 = vpop.permute.xlu0 %125 }
 0x118   :  { %v127_v8 = vsel %vm94_vm4, %v124_v3, %v126_v5  ;;  %v130_v9 = vsel %vm94_vm4, %v126_v5, %v330_v20  ;;  %v175_v22 = vmax.f32 %v159_v14, %v171_v7  ;;  %v173_v27 = vmin.f32 %v159_v14, %v171_v7 }
 0x119   :  { %v131_v12 = vsel %vm345_vm7, %v127_v8, %v122_v4  ;;  %v132_v13 = vsel %vm339_vm6, %v130_v9, %v119_v6  ;;  %v133_v19 = vsel %vm354_vm8, %v122_v4, %v127_v8  ;;  %v134_v21 = vsel %vm358_vm9, %v119_v6, %v130_v9 }
 0x11a   :  { %v161_v16 = vmin.f32 %v131_v12, %v325_v18  ;;  %v162_v17 = vmin.f32 %v132_v13, %v330_v20 }
 0x11c   :  { %v163_v24 = vmin.f32 %v161_v16, %v133_v19  ;;  %v164_v25 = vmin.f32 %v162_v17, %v134_v21 }
 0x11e   :  { %v177_v28 = vmin.f32 %v175_v22, %v163_v24  ;;  %v178_v29 = vmin.f32 %v176_v23, %v164_v25 }
 0x120   :  { %v179_v18 = vmax.f32 %v173_v27, %v177_v28  ;;  %v180_v20 = vmax.f32 %v174_v26, %v178_v29 }
 0x122   :  { %181 = vst [vmem:[#allocation7] sm:$0xff] %v179_v18 }
 0x123   :  { %182 = vst [vmem:[#allocation7 + $0x8] sm:$0xff] %v180_v20 }
 0x124   :  { %193 = dma.vmem_to_hbm [thread:$0]  %s189_s22, 256, %s191_s25, [#allocation4]  }
 0x125   :  { %285 = dma.done.wait [#allocation4], 256  }
 0x126   :  { %286 = vsyncadd [#allocation4], 4294967040 }
 0x127   :  { %198 = vsyncpa [#allocation3], 1 }
 0x128   :  { %199 = vsyncpa [#allocation6], 1 }
 0x129   :  { %200 = vsyncpa [#allocation4], 1 }

</bundles_post_ra>
